<compile_context>
chip_gen: v7x
topology: tpu7x:2x2x1
jax: 0.10.0
libtpu: 0.0.40
codegen_flags: <defaults>
</compile_context>

<pallas_src>
import functools

import jax
import jax.numpy as jnp
from jax import lax
from jax.experimental import pallas as pl
from jax.experimental.pallas import tpu as pltpu

LOG_STD_MIN = -20.0
LOG_STD_MAX = 2.0


def actor_kernel(x_ref,
                 w0_ref, b0_ref,
                 w1_ref, b1_ref,
                 wh_ref, bh_ref,
                 out_ref, *, action_dim):
    # fc0 + relu  (bf16 MXU operands, f32 accumulate / elementwise)
    x = x_ref[...].astype(jnp.bfloat16)
    h = jnp.dot(x, w0_ref[...], preferred_element_type=jnp.float32) + b0_ref[...]
    h = jnp.maximum(h, 0.0)
    # fc1 + relu
    h = jnp.dot(h.astype(jnp.bfloat16), w1_ref[...],
                preferred_element_type=jnp.float32) + b1_ref[...]
    h = jnp.maximum(h, 0.0)
    # fused, lane-padded heads: [mean | log_std | zero-pad] in one MXU pass
    heads = jnp.dot(h.astype(jnp.bfloat16), wh_ref[...],
                    preferred_element_type=jnp.float32) + bh_ref[...]
    # clamp only the log_std half (lanes >= action_dim); pad lanes are zeros
    # and get sliced off in the wrapper, so clamping them is harmless.
    lane = lax.broadcasted_iota(jnp.int32, heads.shape, dimension=1)
    clamped = jnp.clip(heads, LOG_STD_MIN, LOG_STD_MAX)
    out_ref[...] = jnp.where(lane >= action_dim, clamped, heads)


def _choose_batch_tile(B, tile_b):
    """Sublane-aligned batch tile.

    Large tiles win (per-grid-step overhead dwarfs this MLP's work), but once
    the whole batch would fit in one tile and B is big enough, split it in two
    so the "parallel" batch axis feeds both v7x TensorCores.
    """
    if B < 8:
        return B                                   # full-array block
    tb = max(8, (min(tile_b, B) // 8) * 8)
    if B <= tb and B >= 512:
        tb = pl.cdiv(pl.cdiv(B, 2), 8) * 8         # 2-step grid for megacore
    return tb


def actor_forward(state, params, *, tile_b=1024):
    """state: (B, state_dim) f32. params: dict of weights/biases.

    Returns (mean, log_std), each (B, action_dim) f32.
    """
    B, state_dim = state.shape
    action_dim = params["wm"].shape[1]

    # Pack the two heads into one weight/bias and zero-pad to a lane-dense
    # (multiple-of-128) output width.  Under jit with fixed params this folds
    # into constants.
    head_n = max(128, pl.cdiv(2 * action_dim, 128) * 128)
    w_heads = jnp.concatenate([params["wm"], params["ws"]], axis=1)   # (H, 2A)
    b_heads = jnp.concatenate([params["bm"], params["bs"]], axis=1)   # (1, 2A)
    if head_n > 2 * action_dim:
        pad = head_n - 2 * action_dim
        w_heads = jnp.pad(w_heads, ((0, 0), (0, pad)))
        b_heads = jnp.pad(b_heads, ((0, 0), (0, pad)))

    # bf16 MXU operands (biases stay f32; they're added to the f32 accumulator).
    w0 = params["w0"].astype(jnp.bfloat16)
    w1 = params["w1"].astype(jnp.bfloat16)
    w_heads = w_heads.astype(jnp.bfloat16)
    b0 = params["b0"]
    b1 = params["b1"]

    # Batch tiling: big tiles, weights resident across the grid.
    tb = _choose_batch_tile(B, tile_b)
    Bp = pl.cdiv(B, tb) * tb
    if Bp != B:
        state = jnp.pad(state, ((0, Bp - B), (0, 0)))
    grid = (Bp // tb,)

    in_specs = [
        pl.BlockSpec((tb, state_dim), lambda i: (i, 0)),    # state: tiled over batch
        pl.BlockSpec(w0.shape, lambda i: (0, 0)),           # weights/biases: resident
        pl.BlockSpec(b0.shape, lambda i: (0, 0)),
        pl.BlockSpec(w1.shape, lambda i: (0, 0)),
        pl.BlockSpec(b1.shape, lambda i: (0, 0)),
        pl.BlockSpec(w_heads.shape, lambda i: (0, 0)),
        pl.BlockSpec(b_heads.shape, lambda i: (0, 0)),
    ]
    out_specs = pl.BlockSpec((tb, head_n), lambda i: (i, 0))

    # Raise the scoped-VMEM limit only if the footprint gets near v5e's 16 MiB
    # default; cap at v7x's 64 MiB physical VMEM.
    weight_bytes = (w0.size + w1.size + w_heads.size) * 2 \
                   + (b0.size + b1.size + b_heads.size) * 4
    tile_bytes = 4 * tb * (state_dim + head_n)
    est_bytes = 2 * (weight_bytes + tile_bytes)              # double-buffered
    vmem_limit = None
    if est_bytes > 12 * 1024 * 1024:
        vmem_limit = int(min(max(2 * est_bytes, 32 * 1024 * 1024),
                             64 * 1024 * 1024))

    fused = pl.pallas_call(
        functools.partial(actor_kernel, action_dim=action_dim),
        out_shape=jax.ShapeDtypeStruct((Bp, head_n), jnp.float32),
        grid=grid,
        in_specs=in_specs,
        out_specs=out_specs,
        compiler_params=pltpu.CompilerParams(
            dimension_semantics=("parallel",),
            vmem_limit_bytes=vmem_limit),
    )(state, w0, b0, w1, b1, w_heads, b_heads)

    mean = fused[:B, :action_dim]
    log_std = fused[:B, action_dim:2 * action_dim]
    return mean, log_std


def init_actor_params(key, state_dim, action_dim, hidden_sizes):
    """Deterministic synthetic init mirroring Actor.reset_parameters()."""
    assert len(hidden_sizes) == 2, "kernel is written for two hidden layers"
    init_w1 = 0.003   # mean head
    init_w2 = 0.001   # log_std head
    b_init_value = 0.1

    params = {}
    in_size = state_dim
    keys = jax.random.split(key, len(hidden_sizes) + 4)
    for i, h in enumerate(hidden_sizes):
        # fanin_init: uniform(-1/sqrt(fanin), 1/sqrt(fanin))
        bound = 1.0 / jnp.sqrt(jnp.asarray(in_size, jnp.float32))
        params[f"w{i}"] = jax.random.uniform(
            keys[i], (in_size, h), jnp.float32, minval=-bound, maxval=bound)
        params[f"b{i}"] = jnp.full((1, h), b_init_value, jnp.float32)
        in_size = h

    params["wm"] = jax.random.uniform(
        keys[-4], (in_size, action_dim), jnp.float32, minval=-init_w1, maxval=init_w1)
    params["bm"] = jax.random.uniform(
        keys[-3], (1, action_dim), jnp.float32, minval=-init_w1, maxval=init_w1)
    params["ws"] = jax.random.uniform(
        keys[-2], (in_size, action_dim), jnp.float32, minval=-init_w2, maxval=init_w2)
    params["bs"] = jax.random.uniform(
        keys[-1], (1, action_dim), jnp.float32, minval=-init_w2, maxval=init_w2)
    return params


def actor_forward_ref(state, params, *, mxu_dtype=jnp.float32):
    """Pure-JAX reference.  mxu_dtype=jnp.bfloat16 mimics the kernel's MXU casts."""
    cast = lambda a: a.astype(mxu_dtype)
    h = jnp.maximum(jnp.dot(cast(state), cast(params["w0"]),
                            preferred_element_type=jnp.float32) + params["b0"], 0.0)
    h = jnp.maximum(jnp.dot(cast(h), cast(params["w1"]),
                            preferred_element_type=jnp.float32) + params["b1"], 0.0)
    mean = jnp.dot(cast(h), cast(params["wm"]),
                   preferred_element_type=jnp.float32) + params["bm"]
    log_std = jnp.dot(cast(h), cast(params["ws"]),
                      preferred_element_type=jnp.float32) + params["bs"]
    log_std = jnp.clip(log_std, LOG_STD_MIN, LOG_STD_MAX)
    return mean, log_std


# TODO(synk): getAction's sampling / tanh-squash / log_prob tail could be fused into
# this kernel (exp/tanh sit on the otherwise-idle EUP slot; sample via
# pltpu.prng_seed/prng_random_bits); only forward() is ported here per the spec.

if __name__ == "__main__":
    key = jax.random.PRNGKey(0)
    k_param, k_state = jax.random.split(key)

    B, state_dim, action_dim = 16, 16, 4
    hidden_sizes = [32, 32]

    params = init_actor_params(k_param, state_dim, action_dim, hidden_sizes)
    state = jax.random.normal(k_state, (B, state_dim), jnp.float32)

    # tile_b=8 so the small demo batch still exercises a multi-step batch grid.
    mean, log_std = actor_forward(state, params, tile_b=8)
    mean = jax.block_until_ready(mean)
    log_std = jax.block_until_ready(log_std)

    assert mean.shape == (B, action_dim) and log_std.shape == (B, action_dim)

    # Tight check vs a reference that applies the same bf16 MXU-operand casts.
    mean_bf, log_std_bf = actor_forward_ref(state, params, mxu_dtype=jnp.bfloat16)
    assert jnp.allclose(mean, mean_bf, atol=1e-3), "mean mismatch (bf16 ref)"
    assert jnp.allclose(log_std, log_std_bf, atol=1e-3), "log_std mismatch (bf16 ref)"

    # Loose sanity check vs the full-f32 (PyTorch-equivalent) reference.
    mean_f32, log_std_f32 = actor_forward_ref(state, params)
    assert jnp.allclose(mean, mean_f32, atol=5e-2, rtol=5e-2), "mean mismatch (f32 ref)"
    assert jnp.allclose(log_std, log_std_f32, atol=5e-2, rtol=5e-2), "log_std mismatch (f32 ref)"

    print("KERNEL_OK")
</pallas_src>

<mosaic_0001>
module attributes {stable_mosaic.version = 11 : i64} {
  func.func @actor_kernel(%arg0: i32, %arg1: memref<8x16xf32, #tpu.memory_space<vmem>>, %arg2: memref<16x32xbf16, #tpu.memory_space<vmem>>, %arg3: memref<1x32xf32, #tpu.memory_space<vmem>>, %arg4: memref<32x32xbf16, #tpu.memory_space<vmem>>, %arg5: memref<1x32xf32, #tpu.memory_space<vmem>>, %arg6: memref<32x128xbf16, #tpu.memory_space<vmem>>, %arg7: memref<1x128xf32, #tpu.memory_space<vmem>>, %arg8: memref<8x128xf32, #tpu.memory_space<vmem>>) attributes {dimension_semantics = [#tpu.dimension_semantics<parallel>], iteration_bounds = array<i64: 2>, scalar_prefetch = 0 : i64, scratch_operands = 0 : i64, tpu.core_type = #tpu.core_type<tc>, window_params = [{transform_indices = @transform_0, window_bounds = array<i64: 8, 16>}, {pipeline_mode = #tpu.pipeline_mode<synchronous>, transform_indices = @transform_1, window_bounds = array<i64: 16, 32>}, {pipeline_mode = #tpu.pipeline_mode<synchronous>, transform_indices = @transform_2, window_bounds = array<i64: 1, 32>}, {pipeline_mode = #tpu.pipeline_mode<synchronous>, transform_indices = @transform_3, window_bounds = array<i64: 32, 32>}, {pipeline_mode = #tpu.pipeline_mode<synchronous>, transform_indices = @transform_4, window_bounds = array<i64: 1, 32>}, {pipeline_mode = #tpu.pipeline_mode<synchronous>, transform_indices = @transform_5, window_bounds = array<i64: 32, 128>}, {pipeline_mode = #tpu.pipeline_mode<synchronous>, transform_indices = @transform_6, window_bounds = array<i64: 1, 128>}, {transform_indices = @transform_7, window_bounds = array<i64: 8, 128>}]} {
    %c0 = arith.constant 0 : index
    %c0_0 = arith.constant 0 : index
    %0 = vector.load %arg1[%c0, %c0_0] : memref<8x16xf32, #tpu.memory_space<vmem>>, vector<8x16xf32>
    %1 = arith.truncf %0 : vector<8x16xf32> to vector<8x16xbf16>
    %c0_1 = arith.constant 0 : index
    %c0_2 = arith.constant 0 : index
    %2 = vector.load %arg2[%c0_1, %c0_2] : memref<16x32xbf16, #tpu.memory_space<vmem>>, vector<16x32xbf16>
    %cst = arith.constant dense<0.000000e+00> : vector<8x32xf32>
    %3 = tpu.matmul %1, %2, %cst {dimension_numbers = #tpu.dot_dimension_numbers<[1], [0], [0], [1], [0, 0, 1, 1], [], []>} : vector<8x16xbf16>, vector<16x32xbf16>, vector<8x32xf32> -> vector<8x32xf32>
    %c0_3 = arith.constant 0 : index
    %c0_4 = arith.constant 0 : index
    %4 = vector.load %arg3[%c0_3, %c0_4] : memref<1x32xf32, #tpu.memory_space<vmem>>, vector<1x32xf32>
    %5 = vector.broadcast %4 : vector<1x32xf32> to vector<8x32xf32>
    %6 = arith.addf %3, %5 : vector<8x32xf32>
    %cst_5 = arith.constant 0.000000e+00 : f32
    %7 = vector.broadcast %cst_5 : f32 to vector<8x32xf32>
    %8 = arith.maximumf %6, %7 : vector<8x32xf32>
    %9 = arith.truncf %8 : vector<8x32xf32> to vector<8x32xbf16>
    %c0_6 = arith.constant 0 : index
    %c0_7 = arith.constant 0 : index
    %10 = vector.load %arg4[%c0_6, %c0_7] : memref<32x32xbf16, #tpu.memory_space<vmem>>, vector<32x32xbf16>
    %cst_8 = arith.constant dense<0.000000e+00> : vector<8x32xf32>
    %11 = tpu.matmul %9, %10, %cst_8 {dimension_numbers = #tpu.dot_dimension_numbers<[1], [0], [0], [1], [0, 0, 1, 1], [], []>} : vector<8x32xbf16>, vector<32x32xbf16>, vector<8x32xf32> -> vector<8x32xf32>
    %c0_9 = arith.constant 0 : index
    %c0_10 = arith.constant 0 : index
    %12 = vector.load %arg5[%c0_9, %c0_10] : memref<1x32xf32, #tpu.memory_space<vmem>>, vector<1x32xf32>
    %13 = vector.broadcast %12 : vector<1x32xf32> to vector<8x32xf32>
    %14 = arith.addf %11, %13 : vector<8x32xf32>
    %cst_11 = arith.constant 0.000000e+00 : f32
    %15 = vector.broadcast %cst_11 : f32 to vector<8x32xf32>
    %16 = arith.maximumf %14, %15 : vector<8x32xf32>
    %17 = arith.truncf %16 : vector<8x32xf32> to vector<8x32xbf16>
    %c0_12 = arith.constant 0 : index
    %c0_13 = arith.constant 0 : index
    %18 = vector.load %arg6[%c0_12, %c0_13] : memref<32x128xbf16, #tpu.memory_space<vmem>>, vector<32x128xbf16>
    %cst_14 = arith.constant dense<0.000000e+00> : vector<8x128xf32>
    %19 = tpu.matmul %17, %18, %cst_14 {dimension_numbers = #tpu.dot_dimension_numbers<[1], [0], [0], [1], [0, 0, 1, 1], [], []>} : vector<8x32xbf16>, vector<32x128xbf16>, vector<8x128xf32> -> vector<8x128xf32>
    %c0_15 = arith.constant 0 : index
    %c0_16 = arith.constant 0 : index
    %20 = vector.load %arg7[%c0_15, %c0_16] : memref<1x128xf32, #tpu.memory_space<vmem>>, vector<1x128xf32>
    %21 = vector.broadcast %20 : vector<1x128xf32> to vector<8x128xf32>
    %22 = arith.addf %19, %21 : vector<8x128xf32>
    %23 = tpu.iota {dimensions = array<i32: 1>} : vector<8x128xi32>
    %cst_17 = arith.constant -2.000000e+01 : f32
    %cst_18 = arith.constant 2.000000e+00 : f32
    %24 = vector.broadcast %cst_17 : f32 to vector<8x128xf32>
    %25 = arith.maximumf %24, %22 : vector<8x128xf32>
    %26 = vector.broadcast %cst_18 : f32 to vector<8x128xf32>
    %27 = arith.minimumf %26, %25 : vector<8x128xf32>
    %c4_i32 = arith.constant 4 : i32
    %28 = vector.broadcast %c4_i32 : i32 to vector<8x128xi32>
    %29 = arith.cmpi sge, %23, %28 : vector<8x128xi32>
    %30 = arith.select %29, %27, %22 : vector<8x128xi1>, vector<8x128xf32>
    %c0_19 = arith.constant 0 : index
    %c0_20 = arith.constant 0 : index
    %31 = vector.load %arg8[%c0_19, %c0_20] : memref<8x128xf32, #tpu.memory_space<vmem>>, vector<8x128xf32>
    tpu.vector_store %arg8[%c0_19, %c0_20], %30 {strides = array<i32>} : memref<8x128xf32, #tpu.memory_space<vmem>>, vector<8x128xf32>,
    return
  }
  func.func @transform_0(%arg0: i32) -> (i32, i32) {
    %c0_i32 = arith.constant 0 : i32
    %c0_i32_0 = arith.constant 0 : i32
    return %arg0, %c0_i32 : i32, i32
  }
  func.func @transform_1(%arg0: i32) -> (i32, i32) {
    %c0_i32 = arith.constant 0 : i32
    %c0_i32_0 = arith.constant 0 : i32
    %c0_i32_1 = arith.constant 0 : i32
    return %c0_i32, %c0_i32_0 : i32, i32
  }
  func.func @transform_2(%arg0: i32) -> (i32, i32) {
    %c0_i32 = arith.constant 0 : i32
    %c0_i32_0 = arith.constant 0 : i32
    %c0_i32_1 = arith.constant 0 : i32
    return %c0_i32, %c0_i32_0 : i32, i32
  }
  func.func @transform_3(%arg0: i32) -> (i32, i32) {
    %c0_i32 = arith.constant 0 : i32
    %c0_i32_0 = arith.constant 0 : i32
    %c0_i32_1 = arith.constant 0 : i32
    return %c0_i32, %c0_i32_0 : i32, i32
  }
  func.func @transform_4(%arg0: i32) -> (i32, i32) {
    %c0_i32 = arith.constant 0 : i32
    %c0_i32_0 = arith.constant 0 : i32
    %c0_i32_1 = arith.constant 0 : i32
    return %c0_i32, %c0_i32_0 : i32, i32
  }
  func.func @transform_5(%arg0: i32) -> (i32, i32) {
    %c0_i32 = arith.constant 0 : i32
    %c0_i32_0 = arith.constant 0 : i32
    %c0_i32_1 = arith.constant 0 : i32
    return %c0_i32, %c0_i32_0 : i32, i32
  }
  func.func @transform_6(%arg0: i32) -> (i32, i32) {
    %c0_i32 = arith.constant 0 : i32
    %c0_i32_0 = arith.constant 0 : i32
    %c0_i32_1 = arith.constant 0 : i32
    return %c0_i32, %c0_i32_0 : i32, i32
  }
  func.func @transform_7(%arg0: i32) -> (i32, i32) {
    %c0_i32 = arith.constant 0 : i32
    %c0_i32_0 = arith.constant 0 : i32
    return %arg0, %c0_i32 : i32, i32
  }
}

</mosaic_0001>

<bundles_post_ra>
// kernel: tpu_custom_call.1
= control target key start
LH: loop header
LB: loop body
LE: loop exit
PB: predicated region body
PF: predicated region fallthrough
CT: control target
= control target key end

     0   :  { %12 = vsyncpa [#allocation3], 0  ;;  %s1219_s0 = inlined_call_operand.hbm [shape: f32[16,16], index: 0, kind: input, shape index: {}]   ;;  %s1220_s1 = inlined_call_operand.hbm [shape: bf16[16,32], index: 1, kind: input, shape index: {}]   ;;  %s1221_s2 = inlined_call_operand.vmem [shape: f32[1,32], index: 2, kind: input, shape index: {}]   ;;  %s1222_s3 = inlined_call_operand.hbm [shape: bf16[32,32], index: 3, kind: input, shape index: {}]   ;;  %s1223_s4 = inlined_call_operand.vmem [shape: f32[1,32], index: 4, kind: input, shape index: {}]   ;;  %s1224_s5 = inlined_call_operand.vmem [shape: bf16[32,128], index: 5, kind: input, shape index: {}]   ;;  %s1225_s6 = inlined_call_operand.vmem [shape: f32[1,128], index: 6, kind: input, shape index: {}]   ;;  %s1226_s7 = inlined_call_operand.hbm [shape: f32[16,128], index: 7, kind: output, shape index: {}]  }
   0x1   :  { %14 = vsyncpa [#allocation3 + $0x1], 0 }
   0x2   :  { %15 = vsyncpa [#allocation6], 0 }
   0x3   :  { %16 = vsyncpa [#allocation4], 0 }
   0x4   :  { %18 = vsyncpa [#allocation4 + $0x1], 0  ;;  %s971_s24 = smov 0   ;;  %s973_s25 = smov 0  }
   0x5   :  { %s975_s26 = smov 0   ;;  %s977_s27 = smov 0  }
   0x6 LB: > { %s992_s28 = sadd.s32 4294967295, %s921_s27   ;;  %s632_s29 = sadd.s32 4294967294, %s921_s27   ;;  %s921_s27 = sphi %s977_s27, %s1246_s27   ;;  %s917_s26 = sphi %s975_s26, %s1245_s26   ;;  %s913_s25 = sphi %s973_s25, %s1244_s25   ;;  %s909_s24 = sphi %s971_s24, %s1243_s24  }
   0x7   : > { %p44_p0 = scmp.ne.s32.totalorder %s913_s25, %s909_s24  ;;  %p1227_p1 = scmp.eq.s32.totalorder %s992_s28, 0 }
   0x8   : > { %p200_p3 = scmp.eq.s32.totalorder %s632_s29, 1  ;;  %p633_p5 = scmp.ge.s32.totalorder %s921_s27, 1 }
   0x9   : > { %p1001_p4 = por %p1227_p1, %p44_p0  ;;  %p207_p7 = scmp.lt.s32.totalorder %s921_s27, 3 }
   0xa   : > { %p1006_p6 = por %p200_p3, %p44_p0  ;;  %s923_s10 = smov [#allocation5]  }
   0xb   : > { %s1230_s30 = scalar_select %p1001_p4, 1, 0 }
   0xc   : > { %s1231_s8 = scalar_select %p1006_p6, 1, 0 }
   0xd   : > { %p1011_p8 = pnand %p633_p5, %p207_p7  ;;  %s219_s11 = sshll.u32 %s923_s10, 4  ;;  %s1015_s11 = int_to_ptr.vmem [resolvable:$true] %s219_s11 }
   0xe   : > { %s924_s13 = smov [#allocation7]   ;;  %s765_s17 = scalar_lea.hbm %s1220_s1, 128 }
   0xf   : > { %p701_p9 = pneg %p1011_p8  ;;  %s235_s14 = sshll.u32 %s924_s13, 4  ;;  %s1026_s14 = int_to_ptr.vmem [resolvable:$true] %s235_s14 }
  0x10   : > { %p766_p12 = scmp.ne.s32.totalorder %s1220_s1, %s765_s17  ;;  %p772_p5 = scmp.lt.u32.totalorder %s765_s17, %s1220_s1 }
  0x11   : > { %p1022_p11 = pnand %p701_p9, %p1227_p1 }
  0x13   : > { %p767_p13 = pneg %p1022_p11 }
  0x15   : > { %p768_p0 = pnand %p767_p13, %p766_p12 }
  0x17   : > { %p769_p3 = pneg %p768_p0 }
  0x19   : > { %p774_p7 = pnand %p772_p5, %p769_p3 }
  0x1b   : > { %777 = shalt.err (!%p774_p7)
}
  0x1c   : > { %s778_s22 = scalar_lea.vmem %s1015_s11, 128  ;;  %p786_p2 = scmp.lt.s32.totalorder %s1015_s11, %s1015_s11 }
  0x1d   : > { %p779_p9 = scmp.ne.s32.totalorder %s1015_s11, %s778_s22  ;;  %p787_p12 = scmp.lt.s32.totalorder %s778_s22, %s778_s22 }
  0x1f   : > { %p781_p10 = pnand %p779_p9, %p767_p13  ;;  %p788_p0 = por %p787_p12, %p786_p2 }
  0x21   : > { %p782_p1 = pneg %p781_p10 }
  0x23   : > { %p789_p6 = pnand %p788_p0, %p782_p1 }
  0x25   : > { %792 = shalt.err (!%p789_p6)
}
  0x26   : > { %s925_s23 = smov 64   ;;  %s926_s29 = smov 4  }
  0x27   : > { %704 = dma.hbm_to_vmem [thread:$0]  (!%p1022_p11), %s1220_s1, 128, %s1015_s11, [#allocation6], %s925_s23, %s925_s23, %s926_s29  }
  0x28   : > { %s793_s17 = scalar_lea.hbm %s1222_s3, 256 }
  0x29   : > { %p794_p2 = scmp.ne.s32.totalorder %s1222_s3, %s793_s17  ;;  %p800_p10 = scmp.lt.u32.totalorder %s793_s17, %s1222_s3 }
  0x2b   : > { %p796_p1 = pnand %p794_p2, %p767_p13 }
  0x2d   : > { %p797_p6 = pneg %p796_p1 }
  0x2f   : > { %p802_p3 = pnand %p800_p10, %p797_p6 }
  0x31   : > { %805 = shalt.err (!%p802_p3)
}
  0x32   : > { %s806_s11 = scalar_lea.vmem %s1026_s14, 256  ;;  %p814_p12 = scmp.lt.s32.totalorder %s1026_s14, %s1026_s14 }
  0x33   : > { %p807_p5 = scmp.ne.s32.totalorder %s1026_s14, %s806_s11  ;;  %p815_p0 = scmp.lt.s32.totalorder %s806_s11, %s806_s11 }
  0x35   : > { %p809_p7 = pnand %p807_p5, %p767_p13  ;;  %p816_p2 = por %p815_p0, %p814_p12 }
  0x37   : > { %p810_p9 = pneg %p809_p7 }
  0x39   : > { %p817_p1 = pnand %p816_p2, %p810_p9 }
  0x3b   : > { %820 = shalt.err (!%p817_p1)
}
  0x3c   : > { %707 = dma.hbm_to_vmem [thread:$0]  (!%p1022_p11), %s1222_s3, 256, %s1026_s14, [#allocation6], %s925_s23, %s925_s23, %s926_s29  }
  0x3d   : > { %s1081_s13 = sadd.s32 1, %s921_s27   ;;  %s31_s12 = sadd.s32 1, %s917_s26 }
  0x3e   : > { %s28_s15 = ssub.s32 %s921_s27, %s1081_s13  ;;  %p38_p13 = scmp.ne.s32.totalorder %s917_s26, %s913_s25 }
  0x3f   : > { %p29_p6 = scmp.eq.s32.totalorder %s28_s15, 0  ;;  %p39_p10 = scmp.eq.s32.totalorder %s921_s27, 0 }
  0x40   : > { %p1234_p3 = scmp.eq.s32.totalorder %s992_s28, 1  ;;  %p718_p7 = scmp.lt.s32.totalorder %s921_s27, 2 }
  0x41   : > { %s1097_s17 = scalar_select %p29_p6, %s917_s26, %s31_s12  }
  0x42   : > { %p1091_p5 = por %p1234_p3, %p38_p13  ;;  %p40_p9 = por %p39_p10, %p38_p13 }
  0x43   : > { %s258_s18 = sand.u32 1, %s917_s26   ;;  %s638_s14 = sshll.u32 %s921_s27, 7 }
  0x44   : > { %s1235_s16 = scalar_select %p1091_p5, 1, 0 }
  0x45   : > { %s637_s19 = sshll.u32 %s258_s18, 3  ;;  %s1104_s20 = scalar_lea.hbm %s1219_s0, %s638_s14 }
  0x46   : > { %s262_s21 = scalar_lea.vmem [#allocation2], %s637_s19  ;;  %p1108_p11 = pnand %p718_p7, %p40_p9 }
  0x47   : > { %s269_s11 = sshll.u32 %s262_s21, 4  ;;  %s259_s10 = scalar_lea.sflag [#allocation3], %s258_s18  ;;  %s1106_s11 = int_to_ptr.vmem [resolvable:$true] %s269_s11 }
  0x48   : > { %s821_s12 = scalar_lea.hbm %s1104_s20, 128  ;;  %p823_p0 = pneg %p1108_p11 }
  0x49   : > { %p822_p12 = scmp.ne.s32.totalorder %s1104_s20, %s821_s12  ;;  %s826_s14 = scalar_lea.hbm %s1219_s0, 256 }
  0x4a   : > { %p827_p13 = scmp.lt.u32.totalorder %s1104_s20, %s1219_s0  ;;  %p828_p6 = scmp.lt.u32.totalorder %s826_s14, %s821_s12 }
  0x4b   : > { %p824_p2 = pnand %p823_p0, %p822_p12  ;;  %p830_p3 = scmp.lt.u32.totalorder %s821_s12, %s1104_s20 }
  0x4c   : > { %p829_p10 = por %p828_p6, %p827_p13 }
  0x4d   : > { %p825_p1 = pneg %p824_p2 }
  0x4e   : > { %p831_p7 = por %p830_p3, %p829_p10 }
  0x50   : > { %p832_p9 = pnand %p831_p7, %p825_p1 }
  0x52   : > { %835 = shalt.err (!%p832_p9)
}
  0x53   : > { %s836_s18 = scalar_lea.vmem %s1106_s11, 128  ;;  %s927_s21 = smov [#allocation2]  }
  0x54   : > { %p837_p12 = scmp.ne.s32.totalorder %s1106_s11, %s836_s18  ;;  %s841_s15 = sshll.u32 %s927_s21, 4  ;;  %s842_s15 = int_to_ptr.vmem [resolvable:$false] %s841_s15 }
  0x55   : > { %s843_s19 = scalar_lea.vmem %s842_s15, 256  ;;  %p844_p4 = scmp.lt.s32.totalorder %s1106_s11, %s842_s15 }
  0x56   : > { %p839_p2 = pnand %p837_p12, %p823_p0  ;;  %p845_p13 = scmp.lt.s32.totalorder %s843_s19, %s836_s18 }
  0x58   : > { %p840_p5 = pneg %p839_p2  ;;  %p846_p6 = por %p845_p13, %p844_p4 }
  0x5a   : > { %p847_p10 = pnand %p846_p6, %p840_p5 }
  0x5c   : > { %850 = shalt.err (!%p847_p10)
}
  0x5d   : > { %711 = dma.hbm_to_vmem [thread:$0]  (!%p1108_p11), %s1104_s20, 128, %s1106_s11, %s259_s10  }
  0x5e   : > { %278 = sbr.rel (%p1011_p8) target bundleno = 780 (0x30c), region = 48  ;;  %s1140_s12 = sand.u32 (!%p1011_p8), 1, %s913_s25  }
  0x5f   : > { %s640_s14 = sshll.u32 (!%p1011_p8), %s1140_s12, 3  ;;  %s281_s23 = scalar_lea.sflag (!%p1011_p8), [#allocation3], %s1140_s12 }
  0x60   : > { %s284_s29 = scalar_lea.vmem (!%p1011_p8), [#allocation2], %s640_s14  ;;  %p1237_p4 = scmp.ne.s32.totalorder (!%p1011_p8), %s1230_s30, 0 }
  0x65   : > { %896 = dma.done.wait (%p1237_p4), %s281_s23, 128  }
  0x66   : > { %898 = vsyncadd (%p1237_p4), %s281_s23, 4294967168  ;;  %p1238_p5 = scmp.eq.s32.totalorder %s992_s28, 0 }
  0x68   : > { %900 = dma.done.wait (%p1238_p5), [#allocation6], 384   ;;  %p1239_p8 = pmov %p1238_p5 }
  0x69   : > { %v928_v0 = vmov 0.0   ;;  %vm929_vm0 = vmmov 0   ;;  %v760_v1 = vld [vmem:[#allocation5] sm:$0xff]   ;;  %v324_v2 = vld [vmem:[%s284_s29] sm:$0xff]  ;;  %vm341_vm1 = vcmask 130048   ;;  %v761_v4 = vld [vmem:[#allocation7] sm:$0xff]   ;;  %v522_v24 = vlaneseq }
  0x6a   : > { %902 = vsyncadd (%p1239_p8), [#allocation6], 4294966912  ;;  %667 = vmatprep.subr.bf16.mxu0 %v928_v0  ;;  %669 = vmatprep.mubr.msk.bf16.mxu0 %vm929_vm0, %v928_v0  ;;  %v325_v3 = vpack.c.bf16 %v324_v2, %v324_v2  ;;  %v762_v5 = vld [vmem:[#allocation7 + $0x8] sm:$0xff]   ;;  %vm410_vm2 = vcmask 261120   ;;  %v764_v15 = vld [vmem:[%s1224_s5 + $0x8] sm:$0xff]   ;;  %s656_s23 = sshll.u32 %s992_s28, 7 }
  0x6b   : > { %673 = vmatprep.subr.bf16.mxu1 %v928_v0  ;;  %677 = vmatprep.mubr.msk.bf16.mxu1 %vm929_vm0, %v928_v0  ;;  %v763_v6 = vld [vmem:[%s1224_s5] sm:$0xff]   ;;  %v523_v27 = vand.u32 127, %v522_v24  ;;  %s322_s29 = scalar_lea.vmem [#allocation8], %s640_s14  ;;  %s1175_s11 = scalar_lea.hbm %s1226_s7, %s656_s23 }
  0x6c   : > { %668 = vmatpush3.bf16.msra.mxu0 %v760_v1  ;;  %674 = vmatpush3.bf16.msra.mxu1 %v761_v4  ;;  %v644_v7 = vld [vmem:[%s1221_s2] ss:$0 sm:$0xff]  ;;  %s543_s30 = sshll.u32 %s322_s29, 4  ;;  %s530_s22 = scalar_lea.sflag [#allocation4], %s1140_s12  ;;  %s1177_s30 = int_to_ptr.vmem [resolvable:$true] %s543_s30 }
  0x6d   : > { %681 = vmatprep.subr.bf16.mxu0 %v928_v0  ;;  %675 = vmatprep.subr.bf16.mxu1 %v928_v0  ;;  %v647_v16 = vld [vmem:[%s1223_s4] ss:$0 sm:$0xff]  ;;  %vm526_vm3 = vcmp.ge.s32.totalorder %v523_v27, 4  ;;  %s851_s10 = scalar_lea.vmem %s1177_s30, 128  ;;  %p1240_p0 = scmp.ne.s32.totalorder %s1235_s16, 0 }
  0x6e   : > { %v651_v25 = vld [vmem:[%s1225_s6] ss:$0 sm:$0xff]  ;;  %p852_p11 = scmp.ne.s32.totalorder %s1177_s30, %s851_s10  ;;  %s930_s28 = smov [#allocation8]  }
  0x6f   : > { %670 = vmatmul.mubr.msk.bf16.vlgmr.msra.gmra.mrb[0].mxu0 %vm341_vm1, %v325_v3  ;;  %s855_s14 = sshll.u32 %s930_s28, 4  ;;  %s856_s14 = int_to_ptr.vmem [resolvable:$false] %s855_s14 }
  0x70   : > { %685 = vmatprep.mubr.msk.bf16.mxu0 %vm929_vm0, %v928_v0  ;;  %676 = vmatpush3.bf16.msra.mxu1 %v762_v5  ;;  %p853_p1 = pnand %p852_p11, %p1240_p0  ;;  %s857_s18 = scalar_lea.vmem %s856_s14, 256 }
  0x71   : > { %682 = vmatpush3.bf16.msra.mxu0 %v763_v6  ;;  %p858_p7 = scmp.lt.s32.totalorder %s1177_s30, %s856_s14  ;;  %p859_p9 = scmp.lt.s32.totalorder %s857_s18, %s851_s10 }
  0x72   : > { %683 = vmatprep.subr.bf16.mxu0 %v928_v0  ;;  %p854_p3 = pneg %p853_p1 }
  0x73   : > { %p860_p12 = por %p859_p9, %p858_p7 }
  0x75   : > { %684 = vmatpush3.bf16.msra.mxu0 %v764_v15  ;;  %p861_p2 = pnand %p860_p12, %p854_p3 }
 0x142   : > { %v379_v8 = vpop.f32.mrb[0].mxu0 }
 0x143   : > { %v380_v9 = vadd.f32 %v644_v7, %v379_v8  ;;  %v671_v10 = vpop.f32.mrb[1].mxu0 }
 0x144   : > { %v382_v11 = vpop.f32.mrb[2].mxu0 }
 0x145   : > { %v385_v12 = vmax.f32 %v380_v9, 0.0  ;;  %v672_v13 = vpop.f32.mrb[3].mxu0 }
 0x147   : > { %v386_v14 = vpack.c.bf16 %v385_v12, %v385_v12 }
 0x149   : > { %678 = vmatmul.mubr.msk.bf16.vlgmr.msra.gmra.mrb[0].mxu1 %vm410_vm2, %v386_v14 }
 0x21c   : > { %v448_v17 = vpop.f32.mrb[0].mxu1 }
 0x21d   : > { %v449_v18 = vadd.f32 %v647_v16, %v448_v17  ;;  %v679_v19 = vpop.f32.mrb[1].mxu1 }
 0x21e   : > { %v451_v20 = vpop.f32.mrb[2].mxu1 }
 0x21f   : > { %v454_v21 = vmax.f32 %v449_v18, 0.0  ;;  %v680_v22 = vpop.f32.mrb[3].mxu1 }
 0x221   : > { %v455_v23 = vpack.c.bf16 %v454_v21, %v454_v21 }
 0x223   : > { %686 = vmatmul.mubr.msk.bf16.vlgmr.msra.gmra.mrb[4].mxu0 %vm410_vm2, %v455_v23 }
 0x2f6   : > { %v516_v26 = vpop.f32.mrb[4].mxu0 }
 0x2f7   : > { %v517_v28 = vadd.f32 %v651_v25, %v516_v26  ;;  %v687_v29 = vpop.f32.mrb[5].mxu0 }
 0x2f8   : > { %v519_v30 = vpop.f32.mrb[6].mxu0 }
 0x2f9   : > { %v524_v31 = vmax.f32 %v517_v28, -20.0  ;;  %v688_v32 = vpop.f32.mrb[7].mxu0 }
 0x2fb   : > { %v525_v33 = vmin.f32 %v524_v31, 2.0 }
 0x2fd   : > { %v527_v34 = vsel %vm526_vm3, %v525_v33, %v517_v28 }
 0x2fe   : > { %528 = vst [vmem:[%s322_s29] sm:$0xff] %v527_v34 }
 0x2ff   : > { %864 = shalt.err (!%p861_p2)
}
 0x300   : > { %s865_s12 = scalar_lea.hbm %s1175_s11, 128  ;;  %s869_s19 = scalar_lea.hbm %s1226_s7, 256 }
 0x301   : > { %p866_p13 = scmp.ne.s32.totalorder %s1175_s11, %s865_s12  ;;  %p870_p4 = scmp.lt.u32.totalorder %s1175_s11, %s1226_s7 }
 0x302   : > { %p871_p5 = scmp.lt.u32.totalorder %s869_s19, %s865_s12  ;;  %p873_p11 = scmp.lt.u32.totalorder %s865_s12, %s1175_s11 }
 0x303   : > { %p867_p6 = pnand %p866_p13, %p1240_p0 }
 0x304   : > { %p872_p8 = por %p871_p5, %p870_p4 }
 0x305   : > { %p868_p10 = pneg %p867_p6 }
 0x306   : > { %p874_p1 = por %p873_p11, %p872_p8 }
 0x308   : > { %p875_p3 = pnand %p874_p1, %p868_p10 }
 0x30a   : > { %878 = shalt.err (!%p875_p3)
}
 0x30b   : > { %699 = dma.vmem_to_hbm [thread:$0]  (%p1240_p0), %s1177_s30, 128, %s1175_s11, %s530_s22  }
 0x30c PF: > { %s555_s9 = sand.u32 1, %s909_s24   ;;  %p1241_p7 = scmp.ne.s32.totalorder %s1231_s8, 0 }
 0x30d   : > { %p1242_p9 = scmp.ge.s32.totalorder %s921_s27, 2  ;;  %s556_s20 = scalar_lea.sflag [#allocation4], %s555_s9 }
 0x30f   : > { %p713_p12 = pnand %p1242_p9, %p1241_p7 }
 0x311   : > { %904 = dma.done.wait (!%p713_p12), %s556_s20, 128  }
 0x312   : > { %906 = vsyncadd (!%p713_p12), %s556_s20, 4294967168  ;;  %p21_p2 = scmp.ge.s32.totalorder %s1081_s13, 4   ;;  %s1243_s24 = smov %s913_s25 }
 0x313   : > { %s1244_s25 = smov %s917_s26  ;;  %s1245_s26 = smov %s1097_s17 }
 0x314   : > { %s1246_s27 = smov %s1081_s13  ;;  %23 = sbr.rel (!%p21_p2) target bundleno = 6 (0x6), region = 101 }
 0x31b   :  { %561 = vsyncpa [#allocation3], 1 }
 0x31c   :  { %563 = vsyncpa [#allocation3 + $0x1], 1 }
 0x31d   :  { %564 = vsyncpa [#allocation6], 1 }
 0x31e   :  { %565 = vsyncpa [#allocation4], 1 }
 0x31f   :  { %567 = vsyncpa [#allocation4 + $0x1], 1 }

</bundles_post_ra>
